<compile_context>
chip_gen: v7x
topology: tpu7x:2x2x1
jax: 0.10.0
libtpu: 0.0.40
codegen_flags: <defaults>
</compile_context>

<pallas_src>
import jax
import jax.numpy as jnp
from jax.experimental import pallas as pl
from jax.experimental.pallas import tpu as pltpu


def _cdiv(a, b):
    return (a + b - 1) // b


def _round_up(x, m):
    return ((x + m - 1) // m) * m


def _make_vae_loss_kernel(TB, TD, B, D, need_row_mask, need_col_mask):
    """Kernel closed over static tile/shape constants."""

    def kernel(dec_ref, tgt_ref, mu_ref, lv_ref, out_ref, acc_ref, kld_ref):
        i = pl.program_id(0)          # batch-tile row   ("parallel")
        j = pl.program_id(1)          # feature-tile col ("arbitrary", reduction)
        nj = pl.num_programs(1)

        @pl.when(j == 0)
        def _init():
            acc_ref[...] = jnp.zeros_like(acc_ref)
            kld_ref[...] = jnp.zeros_like(kld_ref)

        # KLD is tiny (O(B*Z)); compute it exactly once, on grid point (0, 0).
        # On v7x the parallel axis may be split across TensorCores; each core has
        # its own kld scratch and only the core owning i==0 ever sets it.
        @pl.when(jnp.logical_and(i == 0, j == 0))
        def _kld():
            mu = mu_ref[...].astype(jnp.float32)
            lv = lv_ref[...].astype(jnp.float32)
            kld_ref[...] = -0.5 * jnp.sum(1.0 + lv - mu * mu - jnp.exp(lv),
                                          keepdims=True)

        # Streaming BCE (EUP-bound: 2 transcendentals per element).  Pure
        # elementwise accumulation here; no cross-lane work in the inner loop.
        d = dec_ref[...].astype(jnp.float32)
        t = tgt_ref[...].astype(jnp.float32)
        log_d = jnp.maximum(jnp.log(d), -100.0)          # PyTorch BCE clamp at -100
        log_1md = jnp.maximum(jnp.log(1.0 - d), -100.0)
        # -(t*log_d + (1-t)*log_1md) == -(log_1md + t*(log_d - log_1md))
        bce = -(log_1md + t * (log_d - log_1md))

        # Remainder tiles (shape not a multiple of the tile) are masked here with
        # cheap VALU ops instead of materializing padded HBM copies in the wrapper.
        if need_row_mask or need_col_mask:
            mask = None
            if need_row_mask:
                rows = jax.lax.broadcasted_iota(jnp.int32, (TB, TD), 0) + i * TB
                mask = rows < B
            if need_col_mask:
                cols = jax.lax.broadcasted_iota(jnp.int32, (TB, TD), 1) + j * TD
                cmask = cols < D
                mask = cmask if mask is None else jnp.logical_and(mask, cmask)
            bce = jnp.where(mask, bce, 0.0)

        acc_ref[...] += bce

        # Single epilogue reduction + store per batch-tile row.
        @pl.when(j == nj - 1)
        def _finalize():
            total = jnp.sum(acc_ref[...]) + jnp.sum(kld_ref[...])
            out_ref[...] = total.reshape(1, 1, 1)

    return kernel


def vae_loss(decoded, target, mu, logvar):
    """Pallas implementation of VAELoss.forward((decoded, mu, logvar), target)."""
    assert decoded.shape == target.shape
    assert mu.shape == logvar.shape
    if decoded.ndim != 2:                       # module operates on flat (B, features)
        decoded = decoded.reshape(decoded.shape[0], -1)
        target = target.reshape(decoded.shape)
    B, D = decoded.shape
    n_elems = B * D                             # BCE-mean denominator & KLD divisor

    # ------------------------------ tile selection ------------------------------
    TB_MAX, TD_MAX = 512, 1024                  # <= 2 MiB f32 per streamed block

    # Feature (reduction) axis: full dim when it fits (no wasted lanes), otherwise
    # the smallest 128-multiple covering D with the minimum number of tiles.
    if D <= TD_MAX:
        TD = D
    else:
        d_ceil = _round_up(D, 128)
        n_d_tiles = _cdiv(d_ceil, TD_MAX)
        TD = _round_up(_cdiv(d_ceil, n_d_tiles), 128)
    gj = _cdiv(D, TD)
    need_col_mask = (D % TD) != 0

    # Batch (parallel) axis: aim for >= 2 batch tiles whenever B >= 16 so both
    # v7x TensorCores split the work; multiples of 8 when tiled.
    tb_cap = min(TB_MAX, _round_up(_cdiv(B, 2), 8)) if B >= 16 else TB_MAX
    if B <= tb_cap:
        TB = B                                  # full-dim block (always legal)
    else:
        b_ceil = _round_up(B, 8)
        n_b_tiles = _cdiv(b_ceil, tb_cap)
        TB = _round_up(_cdiv(b_ceil, n_b_tiles), 8)
    gi = _cdiv(B, TB)
    need_row_mask = (B % TB) != 0

    # -------------------------- KLD inputs (mu / logvar) ------------------------
    # 2-D sublane-dense, resident in VMEM when small.  For unusually large latents
    # compute the (tiny, trivially fused) KLD in plain jnp and feed zero
    # placeholders, which contribute exactly 0 inside the kernel.
    if mu.ndim == 2:
        mu2 = mu
    elif mu.ndim == 1:
        mu2 = mu.reshape(1, -1)
    else:
        mu2 = mu.reshape(mu.shape[0], -1)
    lv2 = logvar.reshape(mu2.shape)
    mu_pad_bytes = _round_up(mu2.shape[0], 8) * _round_up(mu2.shape[1], 128) * 4
    kld_in_kernel = (2 * 2 * mu_pad_bytes) <= (8 << 20)    # 2 arrays x 2 buffers
    if kld_in_kernel:
        mu_in, lv_in = mu2, lv2
        kld_extra = jnp.float32(0.0)
    else:
        mu_in = jnp.zeros((1, 1), jnp.float32)
        lv_in = jnp.zeros((1, 1), jnp.float32)
        muf = mu.astype(jnp.float32)
        lvf = logvar.astype(jnp.float32)
        kld_extra = -0.5 * jnp.sum(1.0 + lvf - muf * muf - jnp.exp(lvf))

    # -------------------------------- VMEM budget --------------------------------
    tile_bytes = _round_up(TB, 8) * _round_up(TD, 128) * 4
    stream_bytes = 2 * 2 * tile_bytes                       # dec+tgt, double-buffered
    acc_bytes = tile_bytes                                   # accumulator scratch
    resident_bytes = 2 * 2 * (_round_up(mu_in.shape[0], 8)
                              * _round_up(mu_in.shape[1], 128) * 4)
    vmem_limit = int(min(max(stream_bytes + acc_bytes + resident_bytes + (4 << 20),
                             16 << 20),
                         48 << 20))                          # stays under v7x VMEM

    kernel = _make_vae_loss_kernel(TB, TD, B, D, need_row_mask, need_col_mask)
    mu_shape = mu_in.shape

    partials = pl.pallas_call(
        kernel,
        out_shape=jax.ShapeDtypeStruct((gi, 1, 1), jnp.float32),
        grid_spec=pltpu.PrefetchScalarGridSpec(
            num_scalar_prefetch=0,
            grid=(gi, gj),
            in_specs=[
                pl.BlockSpec((TB, TD), lambda i, j: (i, j)),      # decoded (streamed)
                pl.BlockSpec((TB, TD), lambda i, j: (i, j)),      # target  (streamed)
                pl.BlockSpec(mu_shape, lambda i, j: (0, 0)),      # mu      (resident)
                pl.BlockSpec(mu_shape, lambda i, j: (0, 0)),      # logvar  (resident)
            ],
            out_specs=pl.BlockSpec((1, 1, 1), lambda i, j: (i, 0, 0)),
            scratch_shapes=[
                pltpu.VMEM((TB, TD), jnp.float32),   # elementwise BCE accumulator
                pltpu.VMEM((1, 1), jnp.float32),     # one-shot KLD
            ],
        ),
        compiler_params=pltpu.CompilerParams(
            dimension_semantics=("parallel", "arbitrary"),
            vmem_limit_bytes=vmem_limit,
        ),
    )(decoded, target, mu_in, lv_in)

    # Tiny final reduce of per-batch-tile partials + normalization in plain JAX.
    return (jnp.sum(partials) + kld_extra) / jnp.float32(n_elems)


def vae_loss_ref(decoded, target, mu, logvar):
    """Pure-JAX reference for correctness checking (matches PyTorch semantics)."""
    n = decoded.size
    log_d = jnp.maximum(jnp.log(decoded), -100.0)
    log_1md = jnp.maximum(jnp.log(1.0 - decoded), -100.0)
    bce = jnp.mean(-(target * log_d + (1.0 - target) * log_1md))
    kld = -0.5 * jnp.sum(1.0 + logvar - mu ** 2 - jnp.exp(logvar)) / n
    return bce + kld


def _run_case(key, B, D, Z):
    k1, k2, k3, k4 = jax.random.split(key, 4)
    decoded = jax.nn.sigmoid(jax.random.normal(k1, (B, D), dtype=jnp.float32))
    target = jax.random.uniform(k2, (B, D), dtype=jnp.float32)
    mu = jax.random.normal(k3, (B, Z), dtype=jnp.float32)
    logvar = 0.1 * jax.random.normal(k4, (B, Z), dtype=jnp.float32)

    loss = vae_loss(decoded, target, mu, logvar)
    jax.block_until_ready(loss)
    ref = vae_loss_ref(decoded, target, mu, logvar)
    assert bool(jnp.isfinite(loss)), (B, D, Z, loss)
    assert jnp.allclose(loss, ref, rtol=1e-4, atol=1e-5), (B, D, Z, loss, ref)


if __name__ == "__main__":
    root = jax.random.PRNGKey(0)
    k0, k1, k2 = jax.random.split(root, 3)

    # Small case consistent with the module (flattened SNP autoencoder I/O):
    # single batch tile, single feature tile.
    _run_case(k0, B=2, D=256, Z=32)

    # Non-128-multiple feature dim: one full-width 784-lane tile (no padded EUP
    # work) and two batch tiles so both v7x TensorCores are used.
    _run_case(k1, B=16, D=784, Z=32)

    # Remainder-tile case exercising the in-kernel row/column masking
    # (B not a multiple of the batch tile, D > 1024 and not a multiple of TD).
    _run_case(k2, B=33, D=1300, Z=32)

    print("KERNEL_OK")
</pallas_src>

<mosaic_0001>
module attributes {stable_mosaic.version = 11 : i64} {
  func.func @kernel(%arg0: i32, %arg1: i32, %arg2: memref<2x256xf32, #tpu.memory_space<vmem>>, %arg3: memref<2x256xf32, #tpu.memory_space<vmem>>, %arg4: memref<2x32xf32, #tpu.memory_space<vmem>>, %arg5: memref<2x32xf32, #tpu.memory_space<vmem>>, %arg6: memref<1x1x1xf32, #tpu.memory_space<vmem>>, %arg7: memref<2x256xf32, #tpu.memory_space<vmem>>, %arg8: memref<1x1xf32, #tpu.memory_space<vmem>>) attributes {dimension_semantics = [#tpu.dimension_semantics<parallel>, #tpu.dimension_semantics<arbitrary>], iteration_bounds = array<i64: 1, 1>, scalar_prefetch = 0 : i64, scratch_operands = 2 : i64, tpu.core_type = #tpu.core_type<tc>, window_params = [{transform_indices = @transform_0, window_bounds = array<i64: 2, 256>}, {transform_indices = @transform_1, window_bounds = array<i64: 2, 256>}, {pipeline_mode = #tpu.pipeline_mode<synchronous>, transform_indices = @transform_2, window_bounds = array<i64: 2, 32>}, {pipeline_mode = #tpu.pipeline_mode<synchronous>, transform_indices = @transform_3, window_bounds = array<i64: 2, 32>}, {transform_indices = @transform_4, window_bounds = array<i64: 1, 1, 1>}]} {
    %c0_i32 = arith.constant 0 : i32
    %0 = arith.cmpi eq, %arg1, %c0_i32 : i32
    %1 = arith.extui %0 : i1 to i32
    %c0_i32_0 = arith.constant 0 : i32
    %2 = arith.cmpi ne, %1, %c0_i32_0 : i32
    scf.if %2 {
      %cst_16 = arith.constant 0.000000e+00 : f32
      %29 = vector.broadcast %cst_16 : f32 to vector<2x256xf32>
      %c0_17 = arith.constant 0 : index
      %c0_18 = arith.constant 0 : index
      %30 = vector.load %arg7[%c0_17, %c0_18] : memref<2x256xf32, #tpu.memory_space<vmem>>, vector<2x256xf32>
      tpu.vector_store %arg7[%c0_17, %c0_18], %29 {strides = array<i32>} : memref<2x256xf32, #tpu.memory_space<vmem>>, vector<2x256xf32>,
      %cst_19 = arith.constant 0.000000e+00 : f32
      %31 = vector.broadcast %cst_19 : f32 to vector<1x1xf32>
      %c0_20 = arith.constant 0 : index
      %c0_21 = arith.constant 0 : index
      %32 = vector.load %arg8[%c0_20, %c0_21] : memref<1x1xf32, #tpu.memory_space<vmem>>, vector<1x1xf32>
      tpu.vector_store %arg8[%c0_20, %c0_21], %31 {strides = array<i32>} : memref<1x1xf32, #tpu.memory_space<vmem>>, vector<1x1xf32>,
    } else {
    }
    %c0_i32_1 = arith.constant 0 : i32
    %3 = arith.cmpi eq, %arg0, %c0_i32_1 : i32
    %c0_i32_2 = arith.constant 0 : i32
    %4 = arith.cmpi eq, %arg1, %c0_i32_2 : i32
    %5 = arith.andi %3, %4 : i1
    %6 = arith.extui %5 : i1 to i32
    %c0_i32_3 = arith.constant 0 : i32
    %7 = arith.cmpi ne, %6, %c0_i32_3 : i32
    scf.if %7 {
      %c0_16 = arith.constant 0 : index
      %c0_17 = arith.constant 0 : index
      %29 = vector.load %arg4[%c0_16, %c0_17] : memref<2x32xf32, #tpu.memory_space<vmem>>, vector<2x32xf32>
      %c0_18 = arith.constant 0 : index
      %c0_19 = arith.constant 0 : index
      %30 = vector.load %arg5[%c0_18, %c0_19] : memref<2x32xf32, #tpu.memory_space<vmem>>, vector<2x32xf32>
      %cst_20 = arith.constant 1.000000e+00 : f32
      %31 = vector.broadcast %cst_20 : f32 to vector<2x32xf32>
      %32 = arith.addf %31, %30 : vector<2x32xf32>
      %33 = arith.mulf %29, %29 : vector<2x32xf32>
      %34 = arith.subf %32, %33 : vector<2x32xf32>
      %35 = math.exp %30 : vector<2x32xf32>
      %36 = arith.subf %34, %35 : vector<2x32xf32>
      %37 = vector.shape_cast %36 : vector<2x32xf32> to vector<1x2x32xf32>
      %cst_21 = arith.constant dense<0.000000e+00> : vector<1xf32>
      %38 = vector.multi_reduction <add>, %37, %cst_21 [1, 2] : vector<1x2x32xf32> to vector<1xf32>
      %39 = vector.shape_cast %38 : vector<1xf32> to vector<1x1x1xf32>
      %40 = vector.extract %39[0, 0, 0] : f32 from vector<1x1x1xf32>
      %41 = vector.broadcast %40 : f32 to vector<1x1xf32>
      %cst_22 = arith.constant -5.000000e-01 : f32
      %42 = vector.broadcast %cst_22 : f32 to vector<1x1xf32>
      %43 = arith.mulf %42, %41 : vector<1x1xf32>
      %c0_23 = arith.constant 0 : index
      %c0_24 = arith.constant 0 : index
      %44 = vector.load %arg8[%c0_23, %c0_24] : memref<1x1xf32, #tpu.memory_space<vmem>>, vector<1x1xf32>
      tpu.vector_store %arg8[%c0_23, %c0_24], %43 {strides = array<i32>} : memref<1x1xf32, #tpu.memory_space<vmem>>, vector<1x1xf32>,
    } else {
    }
    %c0 = arith.constant 0 : index
    %c0_4 = arith.constant 0 : index
    %8 = vector.load %arg2[%c0, %c0_4] : memref<2x256xf32, #tpu.memory_space<vmem>>, vector<2x256xf32>
    %c0_5 = arith.constant 0 : index
    %c0_6 = arith.constant 0 : index
    %9 = vector.load %arg3[%c0_5, %c0_6] : memref<2x256xf32, #tpu.memory_space<vmem>>, vector<2x256xf32>
    %10 = math.log %8 : vector<2x256xf32>
    %cst = arith.constant -1.000000e+02 : f32
    %11 = vector.broadcast %cst : f32 to vector<2x256xf32>
    %12 = arith.maximumf %10, %11 : vector<2x256xf32>
    %cst_7 = arith.constant 1.000000e+00 : f32
    %13 = vector.broadcast %cst_7 : f32 to vector<2x256xf32>
    %14 = arith.subf %13, %8 : vector<2x256xf32>
    %15 = math.log %14 : vector<2x256xf32>
    %cst_8 = arith.constant -1.000000e+02 : f32
    %16 = vector.broadcast %cst_8 : f32 to vector<2x256xf32>
    %17 = arith.maximumf %15, %16 : vector<2x256xf32>
    %18 = arith.subf %12, %17 : vector<2x256xf32>
    %19 = arith.mulf %9, %18 : vector<2x256xf32>
    %20 = arith.addf %17, %19 : vector<2x256xf32>
    %cst_9 = arith.constant 0.000000e+00 : f32
    %21 = vector.broadcast %cst_9 : f32 to vector<2x256xf32>
    %22 = arith.subf %21, %20 : vector<2x256xf32>
    %c0_10 = arith.constant 0 : index
    %c0_11 = arith.constant 0 : index
    %23 = vector.load %arg7[%c0_10, %c0_11] : memref<2x256xf32, #tpu.memory_space<vmem>>, vector<2x256xf32>
    %24 = arith.addf %23, %22 : vector<2x256xf32>
    %c0_12 = arith.constant 0 : index
    %c0_13 = arith.constant 0 : index
    %25 = vector.load %arg7[%c0_12, %c0_13] : memref<2x256xf32, #tpu.memory_space<vmem>>, vector<2x256xf32>
    tpu.vector_store %arg7[%c0_12, %c0_13], %24 {strides = array<i32>} : memref<2x256xf32, #tpu.memory_space<vmem>>, vector<2x256xf32>,
    %c0_i32_14 = arith.constant 0 : i32
    %26 = arith.cmpi eq, %arg1, %c0_i32_14 : i32
    %27 = arith.extui %26 : i1 to i32
    %c0_i32_15 = arith.constant 0 : i32
    %28 = arith.cmpi ne, %27, %c0_i32_15 : i32
    scf.if %28 {
      %c0_16 = arith.constant 0 : index
      %c0_17 = arith.constant 0 : index
      %29 = vector.load %arg7[%c0_16, %c0_17] : memref<2x256xf32, #tpu.memory_space<vmem>>, vector<2x256xf32>
      %30 = vector.shape_cast %29 : vector<2x256xf32> to vector<1x2x256xf32>
      %cst_18 = arith.constant dense<0.000000e+00> : vector<1xf32>
      %31 = vector.multi_reduction <add>, %30, %cst_18 [1, 2] : vector<1x2x256xf32> to vector<1xf32>
      %32 = vector.shape_cast %31 : vector<1xf32> to vector<1x1x1xf32>
      %33 = vector.extract %32[0, 0, 0] : f32 from vector<1x1x1xf32>
      %c0_19 = arith.constant 0 : index
      %c0_20 = arith.constant 0 : index
      %34 = vector.load %arg8[%c0_19, %c0_20] : memref<1x1xf32, #tpu.memory_space<vmem>>, vector<1x1xf32>
      %35 = vector.shape_cast %34 : vector<1x1xf32> to vector<1x1x1xf32>
      %cst_21 = arith.constant dense<0.000000e+00> : vector<1xf32>
      %36 = vector.multi_reduction <add>, %35, %cst_21 [1, 2] : vector<1x1x1xf32> to vector<1xf32>
      %37 = vector.shape_cast %36 : vector<1xf32> to vector<1x1x1xf32>
      %38 = vector.extract %37[0, 0, 0] : f32 from vector<1x1x1xf32>
      %39 = arith.addf %33, %38 : f32
      %40 = vector.broadcast %39 : f32 to vector<1x1x1xf32>
      %c0_22 = arith.constant 0 : index
      %c0_23 = arith.constant 0 : index
      %c0_24 = arith.constant 0 : index
      %41 = vector.load %arg6[%c0_22, %c0_23, %c0_24] : memref<1x1x1xf32, #tpu.memory_space<vmem>>, vector<1x1x1xf32>
      tpu.vector_store %arg6[%c0_22, %c0_23, %c0_24], %40 {strides = array<i32>} : memref<1x1x1xf32, #tpu.memory_space<vmem>>, vector<1x1x1xf32>,
    } else {
    }
    return
  }
  func.func @transform_0(%arg0: i32, %arg1: i32) -> (i32, i32) {
    %c0_i32 = arith.constant 0 : i32
    return %arg0, %arg1 : i32, i32
  }
  func.func @transform_1(%arg0: i32, %arg1: i32) -> (i32, i32) {
    %c0_i32 = arith.constant 0 : i32
    return %arg0, %arg1 : i32, i32
  }
  func.func @transform_2(%arg0: i32, %arg1: i32) -> (i32, i32) {
    %c0_i32 = arith.constant 0 : i32
    %c0_i32_0 = arith.constant 0 : i32
    %c0_i32_1 = arith.constant 0 : i32
    return %c0_i32, %c0_i32_0 : i32, i32
  }
  func.func @transform_3(%arg0: i32, %arg1: i32) -> (i32, i32) {
    %c0_i32 = arith.constant 0 : i32
    %c0_i32_0 = arith.constant 0 : i32
    %c0_i32_1 = arith.constant 0 : i32
    return %c0_i32, %c0_i32_0 : i32, i32
  }
  func.func @transform_4(%arg0: i32, %arg1: i32) -> (i32, i32, i32) {
    %c0_i32 = arith.constant 0 : i32
    %c0_i32_0 = arith.constant 0 : i32
    %c0_i32_1 = arith.constant 0 : i32
    return %arg0, %c0_i32, %c0_i32_0 : i32, i32, i32
  }
}

</mosaic_0001>

<bundles_post_ra>
// kernel: tpu_custom_call.1
= control target key start
LH: loop header
LB: loop body
LE: loop exit
PB: predicated region body
PF: predicated region fallthrough
CT: control target
= control target key end

     0   :  { %9 = vsyncpa [#allocation5], 0  ;;  %s307_s0 = inlined_call_operand.hbm [shape: f32[2,256], index: 0, kind: input, shape index: {}]   ;;  %s308_s1 = inlined_call_operand.hbm [shape: f32[2,256], index: 1, kind: input, shape index: {}]   ;;  %s309_s2 = inlined_call_operand.vmem [shape: f32[2,32], index: 2, kind: input, shape index: {}]   ;;  %s310_s3 = inlined_call_operand.vmem [shape: f32[2,32], index: 3, kind: input, shape index: {}]   ;;  %s311_s4 = inlined_call_operand.hbm [shape: f32[1,1,1], index: 4, kind: output, shape index: {}]  }
   0x1   :  { %10 = vsyncpa [#allocation8], 0 }
   0x2   :  { %11 = vsyncpa [#allocation6], 0  ;;  %s233_s15 = smov [#allocation4]   ;;  %s234_s17 = smov [#allocation7]  }
   0x3   :  { %s18_s16 = sshll.u32 %s233_s15, 4  ;;  %s28_s18 = sshll.u32 %s234_s17, 4  ;;  %s19_s16 = int_to_ptr.vmem [resolvable:$true] %s18_s16  ;;  %s29_s18 = int_to_ptr.vmem [resolvable:$true] %s28_s18 }
   0x4   :  { %s161_s21 = scalar_lea.hbm %s307_s0, 64 }
   0x5   :  { %p162_p0 = scmp.ne.s32.totalorder %s307_s0, %s161_s21  ;;  %p165_p1 = scmp.lt.u32.totalorder %s161_s21, %s307_s0 }
   0x7   :  { %p167_p2 = pnand %p165_p1, %p162_p0 }
   0x9   :  { %170 = shalt.err (!%p167_p2)
}
   0xa   :  { %s171_s26 = scalar_lea.vmem %s19_s16, 64  ;;  %p176_p4 = scmp.lt.s32.totalorder %s19_s16, %s19_s16 }
   0xb   :  { %p172_p3 = scmp.ne.s32.totalorder %s19_s16, %s171_s26  ;;  %p177_p5 = scmp.lt.s32.totalorder %s171_s26, %s171_s26 }
   0xd   :  { %p178_p6 = por %p177_p5, %p176_p4 }
   0xf   :  { %p179_p7 = pnand %p178_p6, %p172_p3 }
  0x11   :  { %182 = shalt.err (!%p179_p7)
}
  0x12   :  { %21 = dma.hbm_to_vmem [thread:$0]  %s307_s0, 64, %s19_s16, [#allocation5]  }
  0x13   :  { %s183_s5 = scalar_lea.hbm %s308_s1, 64 }
  0x14   :  { %p184_p8 = scmp.ne.s32.totalorder %s308_s1, %s183_s5  ;;  %p187_p9 = scmp.lt.u32.totalorder %s183_s5, %s308_s1 }
  0x16   :  { %p189_p10 = pnand %p187_p9, %p184_p8 }
  0x18   :  { %192 = shalt.err (!%p189_p10)
}
  0x19   :  { %s193_s10 = scalar_lea.vmem %s29_s18, 64  ;;  %p198_p12 = scmp.lt.s32.totalorder %s29_s18, %s29_s18 }
  0x1a   :  { %p194_p11 = scmp.ne.s32.totalorder %s29_s18, %s193_s10  ;;  %p199_p13 = scmp.lt.s32.totalorder %s193_s10, %s193_s10 }
  0x1c   :  { %p200_p0 = por %p199_p13, %p198_p12 }
  0x1e   :  { %p201_p1 = pnand %p200_p0, %p194_p11 }
  0x20   :  { %204 = shalt.err (!%p201_p1)
}
  0x21   :  { %31 = dma.hbm_to_vmem [thread:$0]  %s308_s1, 64, %s29_s18, [#allocation8]  }
  0x22   :  { %227 = dma.done.wait [#allocation5], 64  }
  0x23   :  { %228 = vsyncadd [#allocation5], 4294967232 }
  0x24   :  { %229 = dma.done.wait [#allocation8], 64  }
  0x25   :  { %230 = vsyncadd [#allocation8], 4294967232  ;;  %v235_v0 = vmov 0.0   ;;  %v55_v1 = vld [vmem:[%s310_s3] sm:$0x3]  ;;  %vm62_vm0 = vcmask 254976  }
  0x26   :  { %46 = vst [vmem:[#allocation2] sm:$0xf] %v235_v0  ;;  %v77_v2 = vld [vmem:[#allocation4] sm:$0xf]  ;;  %v59_v3 = vmul.f32 1.442695, %v55_v1 }
  0x27   :  { %155 = vlog2.f32 %v77_v2  ;;  %v82_v4 = vsub.f32 1.0, %v77_v2  ;;  %v54_v5 = vld [vmem:[%s309_s2] sm:$0x3]  ;;  %v56_v6 = vadd.f32 1.0, %v55_v1  ;;  %v78_v18 = vld [vmem:[#allocation7] sm:$0xf] }
  0x28   :  { %157 = vpow2.f32 %v59_v3  ;;  %v57_v7 = vmul.f32 %v54_v5, %v54_v5  ;;  %vm108_vm1 = vcmask 1041408   ;;  %vm47_vm2 = vcmask 0   ;;  %s236_s3 = smov [#allocation9]  }
  0x29   :  { %159 = vlog2.f32 %v82_v4  ;;  %48 = vst.msk [vmem:[#allocation3] sm:$0x1] %vm47_vm2, %v235_v0  ;;  %s134_s16 = sshll.u32 %s236_s3, 4  ;;  %s135_s16 = int_to_ptr.vmem [resolvable:$true] %s134_s16 }
  0x2a   :  { %v58_v8 = vsub.f32 %v56_v6, %v57_v7  ;;  %s205_s19 = scalar_lea.vmem %s135_s16, 16  ;;  %s209_s20 = scalar_lea.vmem %s135_s16, 32 }
  0x2b   :  { %p206_p2 = scmp.ne.s32.totalorder %s135_s16, %s205_s19  ;;  %p210_p3 = scmp.lt.s32.totalorder %s135_s16, %s135_s16 }
  0x2c   :  { %p211_p4 = scmp.lt.s32.totalorder %s209_s20, %s205_s19 }
  0x2d   :  { %v90_v22 = vld [vmem:[#allocation2] sm:$0xf] }
  0x2e   :  { %p212_p5 = por %p211_p4, %p210_p3 }
  0x30   :  { %p213_p6 = pnand %p212_p5, %p206_p2 }
  0x31   :  { %v156_v9 = vpop.eup %155 }
  0x32   :  { %v80_v10 = vmul.f32 0.6931472, %v156_v9  ;;  %v158_v11 = vpop.eup %157 }
  0x33   :  { %v160_v12 = vpop.eup %159  ;;  %v61_v13 = vsub.f32 %v58_v8, %v158_v11 }
  0x34   :  { %v81_v14 = vmax.f32 %v80_v10, -100.0  ;;  %v84_v15 = vmul.f32 0.6931472, %v160_v12 }
  0x35   :  { %v63_v16 = vsel %vm62_vm0, %v61_v13, 0.0 }
  0x36   :  { %64 = vadd.xlane.f32.xlu0 %v63_v16  ;;  %v85_v17 = vmax.f32 %v84_v15, -100.0 }
  0x38   :  { %v86_v19 = vsub.f32 %v81_v14, %v85_v17 }
  0x3a   :  { %v87_v20 = vmul.f32 %v86_v19, %v78_v18 }
  0x3c   :  { %v88_v21 = vadd.f32 %v87_v20, %v85_v17 }
  0x3e   :  { %v89_v23 = vsub.f32 0.0, %v88_v21 }
  0x40   :  { %v91_v24 = vadd.f32 %v90_v22, %v89_v23 }
  0x42   :  { %92 = vst [vmem:[#allocation2] sm:$0xf] %v91_v24 }
  0x49   :  { %v144_v25 = vld.sshfl [vmem:[#allocation2] sm:$0x33 pattern:$0x76325410] }
  0x4a   :  { %v105_v26 = vcombine.high %v144_v25, %v144_v25  ;;  %v109_v27 = vsel %vm108_vm1, %v144_v25, 0.0 }
  0x4c   :  { %v110_v28 = vsel %vm108_vm1, %v105_v26, 0.0 }
  0x4d   :  { %v111_v29 = vadd.f32 %v110_v28, %v109_v27 }
  0x4f   :  { %112 = vadd.xlane.f32.xlu0 %v111_v29 }
  0xc3   :  { %v65_v30 = vpop.xlane.xlu0 %64 }
  0xc4   :  { %v66_v31 = vrot.slane %v65_v30, 4 }
  0xc6   :  { %v67_v32 = vadd.f32 %v66_v31, %v65_v30 }
  0xc8   :  { %v68_v33 = vrot.slane %v67_v32, 2 }
  0xca   :  { %v69_v34 = vadd.f32 %v68_v33, %v67_v32 }
  0xcc   :  { %v70_v35 = vrot.slane %v69_v34, 1 }
  0xce   :  { %v71_v36 = vadd.f32 %v70_v35, %v69_v34 }
  0xd0   :  { %145 = vpush %v71_v36 }
  0xdc   :  { %v113_v37 = vpop.xlane.xlu0 %112 }
  0xdd   :  { %v114_v38 = vrot.slane %v113_v37, 4 }
  0xdf   :  { %v115_v39 = vadd.f32 %v114_v38, %v113_v37 }
  0xe1   :  { %v116_v40 = vrot.slane %v115_v39, 2 }
  0xe3   :  { %v117_v41 = vadd.f32 %v116_v40, %v115_v39 }
  0xe5   :  { %v118_v42 = vrot.slane %v117_v41, 1 }
  0xe7   :  { %v119_v43 = vadd.f32 %v118_v42, %v117_v41 }
  0xe9   :  { %147 = vpush %v119_v43 }
 0x101   :  { %s146_s1 = spop %145 }
 0x102   :  { %v73_v44 = vstv %s146_s1 }
 0x103   :  { %v74_v45 = vmul.f32 -0.5, %v73_v44 }
 0x105   :  { %76 = vst.msk [vmem:[#allocation3] sm:$0x1] %vm47_vm2, %v74_v45 }
 0x10c   :  { %v121_v46 = vld [vmem:[#allocation3] sm:$0x1] }
 0x10d   :  { %149 = vpush %v121_v46 }
 0x11a   :  { %s148_s2 = spop %147 }
 0x13e   :  { %s150_s17 = spop %149 }
 0x13f   :  { %s124_s18 = sadd.f32 %s150_s17, %s148_s2 }
 0x141   :  { %v125_v47 = vstv %s124_s18 }
 0x142   :  { %127 = vst.msk [vmem:[#allocation9] sm:$0x1] %vm47_vm2, %v125_v47 }
 0x143   :  { %216 = shalt.err (!%p213_p6)
}
 0x144   :  { %s217_s23 = scalar_lea.hbm %s311_s4, 16 }
 0x145   :  { %p218_p7 = scmp.ne.s32.totalorder %s311_s4, %s217_s23  ;;  %p221_p8 = scmp.lt.u32.totalorder %s217_s23, %s311_s4 }
 0x147   :  { %p223_p9 = pnand %p221_p8, %p218_p7 }
 0x149   :  { %226 = shalt.err (!%p223_p9)
}
 0x14a   :  { %137 = dma.vmem_to_hbm [thread:$0]  %s135_s16, 16, %s311_s4, [#allocation6]  }
 0x14b   :  { %231 = dma.done.wait [#allocation6], 16  }
 0x14c   :  { %232 = vsyncadd [#allocation6], 4294967280 }
 0x14d   :  { %141 = vsyncpa [#allocation5], 1 }
 0x14e   :  { %142 = vsyncpa [#allocation8], 1 }
 0x14f   :  { %143 = vsyncpa [#allocation6], 1 }

</bundles_post_ra>
